<compile_context>
chip_gen: v7x
topology: tpu7x:2x2x1
jax: 0.10.0
libtpu: 0.0.40
codegen_flags: <defaults>
</compile_context>

<pallas_src>
import functools

import jax
import jax.numpy as jnp
import numpy as np
from jax.experimental import pallas as pl
from jax.experimental.pallas import tpu as pltpu

BN_EPS = 1e-5  # the module's bn_eps


# ----------------------------------------------------------------------------
# Fused Pallas kernel: maxpool branch + conv/BN/ReLU branch in one pass.
# ----------------------------------------------------------------------------
def _mixed3a_kernel(xm_ref, xh_ref, w_ref, b_ref, pool_ref, conv_ref, buf_ref,
                    *, wc8, tr, cin):
    """One (batch, row-tile) grid step.

    xm_ref  : (1, tr, wc8, 4*cin)  bf16  packed phase planes, this tile's rows
    xh_ref  : (1, 1,  wc8, 4*cin)  bf16  halo plane row (first row of next tile)
    w_ref   : (4, 4*cin, CoutP)    bf16  K-packed, BN-folded conv weights
    b_ref   : (1, CoutP)           f32   folded BN bias (padded)
    pool_ref: (1, tile, cin)       bf16  maxpool branch output
    conv_ref: (1, tile, CoutP)     bf16  conv + BN + ReLU branch output
    buf_ref : ((tr+2)*wc8, 4*cin)  f32   VMEM scratch (tile + halo + zero row)
    """
    tile = tr * wc8
    coutp = conv_ref.shape[-1]

    # Assemble the halo'd flattened plane in an f32 scratch; bf16 stays the HBM
    # storage format, f32 keeps the sublane-shifted slices on a safe path.
    buf_ref[0:tile, :] = xm_ref[0].reshape(tile, 4 * cin).astype(jnp.float32)
    buf_ref[tile:tile + wc8, :] = xh_ref[0, 0].astype(jnp.float32)
    buf_ref[tile + wc8:tile + 2 * wc8, :] = jnp.zeros((wc8, 4 * cin), jnp.float32)

    # Row-shift groups g = (qi, qj): shift s = qi*wc8 + qj, slice buf[s:s+tile].
    # Valid tap phases per group (others have zero weight rows and are excluded
    # from the pooling max).
    shifts = (0, 1, wc8, wc8 + 1)
    valid_phases = ((0, 1, 2, 3), (0, 2), (0, 1), (0,))

    acc = jnp.zeros((tile, coutp), jnp.float32)
    pmax = jnp.full((tile, cin), -jnp.inf, jnp.float32)
    for g, s in enumerate(shifts):
        x = buf_ref[s:s + tile, :]                         # (tile, 4*cin) f32
        acc = acc + jnp.dot(x.astype(jnp.bfloat16), w_ref[g],   # 1 MXU pass,
                            preferred_element_type=jnp.float32)  # K = 256
        for p in valid_phases[g]:                          # pool branch (VPU)
            pmax = jnp.maximum(pmax, x[:, p * cin:(p + 1) * cin])

    conv_ref[0] = jnp.maximum(acc + b_ref[...], 0.0).astype(conv_ref.dtype)
    # TODO(synk): pool output keeps its natural 64-lane width (masked stores);
    # a lane-dense repack was left out to keep HBM write bytes minimal.
    pool_ref[0] = pmax.astype(pool_ref.dtype)


# ----------------------------------------------------------------------------
# Wrapper (layout glue around the single fused kernel)
# ----------------------------------------------------------------------------
@jax.jit
def incept_block_3a(params, x_nchw):
    """Forward pass of InceptBlock3a.  Input NCHW, output NCHW (like PyTorch)."""
    n, cin, h, w = x_nchw.shape
    ho = (h - 3) // 2 + 1                               # 3x3, stride 2, no pad
    wo = (w - 3) // 2 + 1
    wc8 = ((wo + 1 + 7) // 8) * 8                       # padded plane width (cols)

    # Output-row tiling: ~2048 flattened positions per grid step, rebalanced.
    tr = min(ho, max(1, 2048 // wc8))
    nt = -(-ho // tr)
    tr = -(-ho // nt)
    hop = nt * tr                                       # padded output rows
    hp = hop + 1                                        # plane rows (+1 halo)
    tile = tr * wc8
    loutp = hop * wc8

    # One fused pass: NCHW f32 -> bf16, zero-pad, space-to-phase split, packed
    # along lanes as [phase(0,0) | phase(0,1) | phase(1,0) | phase(1,1)] x cin.
    xb = x_nchw.astype(jnp.bfloat16)
    xp = jnp.pad(xb, ((0, 0), (0, 0), (0, 2 * hp - h), (0, 2 * wc8 - w)))
    xpk = (xp.reshape(n, cin, hp, 2, wc8, 2)
             .transpose(0, 2, 4, 3, 5, 1)
             .reshape(n, hp, wc8, 4 * cin))
    # TODO(synk): the phase-split could be skipped entirely with in-kernel
    # strided DMAs from the raw NCHW input (memory_space=pl.ANY); kept as one
    # fused XLA pass here for robustness.

    w_pk = params['w']                                  # (4, 4*cin, CoutP) bf16
    bias = params['bias']                               # (1, CoutP) f32
    coutp = w_pk.shape[-1]
    cout = params['w_ref'].shape[-1]                    # true out channels (96)

    kernel = functools.partial(_mixed3a_kernel, wc8=wc8, tr=tr, cin=cin)
    pool_flat, conv_flat = pl.pallas_call(
        kernel,
        out_shape=(jax.ShapeDtypeStruct((n, loutp, cin), jnp.bfloat16),
                   jax.ShapeDtypeStruct((n, loutp, coutp), jnp.bfloat16)),
        grid_spec=pltpu.PrefetchScalarGridSpec(
            num_scalar_prefetch=0,
            grid=(n, nt),                               # batch x row-tiles
            in_specs=[
                pl.BlockSpec((1, tr, wc8, 4 * cin), lambda b, i: (b, i, 0, 0)),
                pl.BlockSpec((1, 1, wc8, 4 * cin),
                             lambda b, i: (b, (i + 1) * tr, 0, 0)),
                pl.BlockSpec((4, 4 * cin, coutp), lambda b, i: (0, 0, 0)),
                pl.BlockSpec((1, coutp), lambda b, i: (0, 0)),
            ],
            out_specs=(
                pl.BlockSpec((1, tile, cin), lambda b, i: (b, i, 0)),
                pl.BlockSpec((1, tile, coutp), lambda b, i: (b, i, 0)),
            ),
            scratch_shapes=[pltpu.VMEM(((tr + 2) * wc8, 4 * cin), jnp.float32)],
        ),
        compiler_params=pltpu.CompilerParams(
            dimension_semantics=("parallel", "parallel"),
            vmem_limit_bytes=32 * 1024 * 1024),
    )(xpk, xpk, w_pk, bias)

    # Tiny glue: crop padded rows/cols/lanes, concat (pool first, matching the
    # Concurrent order), NHWC -> NCHW, back to f32 like the PyTorch module.
    pool = pool_flat.reshape(n, hop, wc8, cin)[:, :ho, :wo, :]
    conv = conv_flat.reshape(n, hop, wc8, coutp)[:, :ho, :wo, :cout]
    y = jnp.concatenate([pool, conv], axis=-1).astype(jnp.float32)
    return jnp.transpose(y, (0, 3, 1, 2))


# ----------------------------------------------------------------------------
# Parameters (deterministic synthetic init, shapes from the module __init__)
# ----------------------------------------------------------------------------
def init_params(key, cin=64, cout=96, bn_eps=BN_EPS):
    ks = jax.random.split(key, 5)
    w = jax.random.normal(ks[0], (3, 3, cin, cout), jnp.float32) / np.sqrt(9 * cin)
    gamma = 1.0 + 0.1 * jax.random.normal(ks[1], (cout,), jnp.float32)
    beta = 0.1 * jax.random.normal(ks[2], (cout,), jnp.float32)
    mean = 0.1 * jax.random.normal(ks[3], (cout,), jnp.float32)
    var = jnp.abs(jax.random.normal(ks[4], (cout,), jnp.float32)) + 0.5
    # TODO(synk): BN is folded as an inference-mode (running-stats) affine;
    # training-mode batch statistics are not modeled.
    scale = gamma / jnp.sqrt(var + bn_eps)
    bias = beta - mean * scale
    w_folded = w * scale                                # exact fold of BN scale

    coutp = ((cout + 127) // 128) * 128                 # 96 -> 128 (lane-dense)

    # K-packed weights: one (4*cin, coutp) matrix per row-shift group
    # g = 2*qi + qj; rows [p*cin:(p+1)*cin] hold tap (2*qi + p//2, 2*qj + p%2)
    # when it is inside the 3x3 window, else zeros.
    w_np = np.asarray(w_folded)
    w_pk = np.zeros((4, 4 * cin, coutp), np.float32)
    for qi in range(2):
        for qj in range(2):
            g = 2 * qi + qj
            for a in range(2):
                for b in range(2):
                    di, dj = 2 * qi + a, 2 * qj + b
                    if di < 3 and dj < 3:
                        p = 2 * a + b
                        w_pk[g, p * cin:(p + 1) * cin, :cout] = w_np[di, dj]
    bias_p = np.zeros((1, coutp), np.float32)
    bias_p[0, :cout] = np.asarray(bias)

    return {
        'w': jnp.asarray(w_pk, jnp.bfloat16),           # K-packed kernel weights
        'bias': jnp.asarray(bias_p, jnp.float32),       # padded folded bias
        'w_ref': w_folded,                              # f32 HWIO weights (ref)
        'bias_ref': bias,                               # f32 bias (ref)
    }


# ----------------------------------------------------------------------------
# Pure-JAX reference (correctness check)
# ----------------------------------------------------------------------------
def _ref_maxpool3x3s2(x, ho, wo):
    out = None
    for di in range(3):
        for dj in range(3):
            tap = x[:, di::2, dj::2, :][:, :ho, :wo, :]
            out = tap if out is None else jnp.maximum(out, tap)
    return out


def reference_forward(params, x_nchw):
    x = jnp.transpose(x_nchw, (0, 2, 3, 1))
    _, h, w, _ = x.shape
    ho, wo = (h - 3) // 2 + 1, (w - 3) // 2 + 1
    conv = jax.lax.conv_general_dilated(
        x, params['w_ref'], window_strides=(2, 2), padding='VALID',
        dimension_numbers=('NHWC', 'HWIO', 'NHWC'),
        precision=jax.lax.Precision.HIGHEST)
    conv = jnp.maximum(conv + params['bias_ref'].reshape(1, 1, 1, -1), 0.0)
    pool = _ref_maxpool3x3s2(x, ho, wo)
    y = jnp.concatenate([pool, conv], axis=-1)          # branch order: pool, conv
    return jnp.transpose(y, (0, 3, 1, 2))


# ----------------------------------------------------------------------------
if __name__ == "__main__":
    key = jax.random.PRNGKey(0)
    kp, kx = jax.random.split(key)
    params = init_params(kp)

    # in_channels is fixed to 64 by the module; odd spatial like real Inception.
    N, C, H, W = 2, 64, 15, 15
    x = jax.random.normal(kx, (N, C, H, W), jnp.float32)

    out = jax.block_until_ready(incept_block_3a(params, x))
    Ho, Wo = (H - 3) // 2 + 1, (W - 3) // 2 + 1
    assert out.shape == (N, 64 + 96, Ho, Wo), out.shape

    ref = reference_forward(params, x)
    np.testing.assert_allclose(np.asarray(out), np.asarray(ref),
                               rtol=2e-2, atol=2e-2)
    print("KERNEL_OK")
</pallas_src>

<mosaic_0001>
module attributes {stable_mosaic.version = 11 : i64} {
  func.func @_mixed3a_kernel(%arg0: i32, %arg1: i32, %arg2: memref<1x7x8x256xbf16, #tpu.memory_space<vmem>>, %arg3: memref<1x1x8x256xbf16, #tpu.memory_space<vmem>>, %arg4: memref<4x256x128xbf16, #tpu.memory_space<vmem>>, %arg5: memref<1x128xf32, #tpu.memory_space<vmem>>, %arg6: memref<1x56x64xbf16, #tpu.memory_space<vmem>>, %arg7: memref<1x56x128xbf16, #tpu.memory_space<vmem>>, %arg8: memref<72x256xf32, #tpu.memory_space<vmem>>) attributes {dimension_semantics = [#tpu.dimension_semantics<parallel>, #tpu.dimension_semantics<parallel>], iteration_bounds = array<i64: 2, 1>, scalar_prefetch = 0 : i64, scratch_operands = 1 : i64, tpu.core_type = #tpu.core_type<tc>, window_params = [{transform_indices = @transform_0, window_bounds = array<i64: 1, 7, 8, 256>}, {transform_indices = @transform_1, window_bounds = array<i64: 1, 1, 8, 256>}, {pipeline_mode = #tpu.pipeline_mode<synchronous>, transform_indices = @transform_2, window_bounds = array<i64: 4, 256, 128>}, {pipeline_mode = #tpu.pipeline_mode<synchronous>, transform_indices = @transform_3, window_bounds = array<i64: 1, 128>}, {transform_indices = @transform_4, window_bounds = array<i64: 1, 56, 64>}, {transform_indices = @transform_5, window_bounds = array<i64: 1, 56, 128>}]} {
    %c0 = arith.constant 0 : index
    %c0_0 = arith.constant 0 : index
    %c0_1 = arith.constant 0 : index
    %c0_2 = arith.constant 0 : index
    %0 = vector.load %arg2[%c0, %c0_0, %c0_1, %c0_2] : memref<1x7x8x256xbf16, #tpu.memory_space<vmem>>, vector<1x7x8x256xbf16>
    %1 = vector.shape_cast %0 : vector<1x7x8x256xbf16> to vector<7x8x256xbf16>
    %2 = vector.shape_cast %1 : vector<7x8x256xbf16> to vector<56x256xbf16>
    %3 = arith.extf %2 : vector<56x256xbf16> to vector<56x256xf32>
    %c0_3 = arith.constant 0 : index
    %c0_4 = arith.constant 0 : index
    %4 = vector.load %arg8[%c0_3, %c0_4] : memref<72x256xf32, #tpu.memory_space<vmem>>, vector<56x256xf32>
    tpu.vector_store %arg8[%c0_3, %c0_4], %3 {strides = array<i32>} : memref<72x256xf32, #tpu.memory_space<vmem>>, vector<56x256xf32>,
    %c0_5 = arith.constant 0 : index
    %c0_6 = arith.constant 0 : index
    %c0_7 = arith.constant 0 : index
    %c0_8 = arith.constant 0 : index
    %5 = vector.load %arg3[%c0_5, %c0_6, %c0_7, %c0_8] : memref<1x1x8x256xbf16, #tpu.memory_space<vmem>>, vector<1x1x8x256xbf16>
    %6 = vector.shape_cast %5 : vector<1x1x8x256xbf16> to vector<8x256xbf16>
    %7 = arith.extf %6 : vector<8x256xbf16> to vector<8x256xf32>
    %c56 = arith.constant 56 : index
    %c0_9 = arith.constant 0 : index
    %8 = vector.load %arg8[%c56, %c0_9] : memref<72x256xf32, #tpu.memory_space<vmem>>, vector<8x256xf32>
    tpu.vector_store %arg8[%c56, %c0_9], %7 {strides = array<i32>} : memref<72x256xf32, #tpu.memory_space<vmem>>, vector<8x256xf32>,
    %cst = arith.constant 0.000000e+00 : f32
    %9 = vector.broadcast %cst : f32 to vector<8x256xf32>
    %c64 = arith.constant 64 : index
    %c0_10 = arith.constant 0 : index
    %10 = vector.load %arg8[%c64, %c0_10] : memref<72x256xf32, #tpu.memory_space<vmem>>, vector<8x256xf32>
    tpu.vector_store %arg8[%c64, %c0_10], %9 {strides = array<i32>} : memref<72x256xf32, #tpu.memory_space<vmem>>, vector<8x256xf32>,
    %cst_11 = arith.constant 0.000000e+00 : f32
    %11 = vector.broadcast %cst_11 : f32 to vector<56x128xf32>
    %cst_12 = arith.constant 0xFF800000 : f32
    %12 = vector.broadcast %cst_12 : f32 to vector<56x64xf32>
    %c0_13 = arith.constant 0 : index
    %c0_14 = arith.constant 0 : index
    %13 = vector.load %arg8[%c0_13, %c0_14] : memref<72x256xf32, #tpu.memory_space<vmem>>, vector<56x256xf32>
    %14 = arith.truncf %13 : vector<56x256xf32> to vector<56x256xbf16>
    %c0_15 = arith.constant 0 : index
    %c0_16 = arith.constant 0 : index
    %c0_17 = arith.constant 0 : index
    %15 = vector.load %arg4[%c0_15, %c0_16, %c0_17] : memref<4x256x128xbf16, #tpu.memory_space<vmem>>, vector<1x256x128xbf16>
    %16 = vector.shape_cast %15 : vector<1x256x128xbf16> to vector<256x128xbf16>
    %cst_18 = arith.constant dense<0.000000e+00> : vector<56x128xf32>
    %17 = tpu.matmul %14, %16, %cst_18 {dimension_numbers = #tpu.dot_dimension_numbers<[1], [0], [0], [1], [0, 0, 1, 1], [], []>} : vector<56x256xbf16>, vector<256x128xbf16>, vector<56x128xf32> -> vector<56x128xf32>
    %18 = arith.addf %11, %17 : vector<56x128xf32>
    %19 = vector.extract_strided_slice %13 {offsets = [0, 0], sizes = [56, 64], strides = [1, 1]} : vector<56x256xf32> to vector<56x64xf32>
    %20 = arith.maximumf %12, %19 : vector<56x64xf32>
    %21 = vector.extract_strided_slice %13 {offsets = [0, 64], sizes = [56, 64], strides = [1, 1]} : vector<56x256xf32> to vector<56x64xf32>
    %22 = arith.maximumf %20, %21 : vector<56x64xf32>
    %23 = vector.extract_strided_slice %13 {offsets = [0, 128], sizes = [56, 64], strides = [1, 1]} : vector<56x256xf32> to vector<56x64xf32>
    %24 = arith.maximumf %22, %23 : vector<56x64xf32>
    %25 = vector.extract_strided_slice %13 {offsets = [0, 192], sizes = [56, 64], strides = [1, 1]} : vector<56x256xf32> to vector<56x64xf32>
    %26 = arith.maximumf %24, %25 : vector<56x64xf32>
    %c1 = arith.constant 1 : index
    %c0_19 = arith.constant 0 : index
    %27 = vector.load %arg8[%c1, %c0_19] : memref<72x256xf32, #tpu.memory_space<vmem>>, vector<56x256xf32>
    %28 = arith.truncf %27 : vector<56x256xf32> to vector<56x256xbf16>
    %c1_20 = arith.constant 1 : index
    %c0_21 = arith.constant 0 : index
    %c0_22 = arith.constant 0 : index
    %29 = vector.load %arg4[%c1_20, %c0_21, %c0_22] : memref<4x256x128xbf16, #tpu.memory_space<vmem>>, vector<1x256x128xbf16>
    %30 = vector.shape_cast %29 : vector<1x256x128xbf16> to vector<256x128xbf16>
    %cst_23 = arith.constant dense<0.000000e+00> : vector<56x128xf32>
    %31 = tpu.matmul %28, %30, %cst_23 {dimension_numbers = #tpu.dot_dimension_numbers<[1], [0], [0], [1], [0, 0, 1, 1], [], []>} : vector<56x256xbf16>, vector<256x128xbf16>, vector<56x128xf32> -> vector<56x128xf32>
    %32 = arith.addf %18, %31 : vector<56x128xf32>
    %33 = vector.extract_strided_slice %27 {offsets = [0, 0], sizes = [56, 64], strides = [1, 1]} : vector<56x256xf32> to vector<56x64xf32>
    %34 = arith.maximumf %26, %33 : vector<56x64xf32>
    %35 = vector.extract_strided_slice %27 {offsets = [0, 128], sizes = [56, 64], strides = [1, 1]} : vector<56x256xf32> to vector<56x64xf32>
    %36 = arith.maximumf %34, %35 : vector<56x64xf32>
    %c8 = arith.constant 8 : index
    %c0_24 = arith.constant 0 : index
    %37 = vector.load %arg8[%c8, %c0_24] : memref<72x256xf32, #tpu.memory_space<vmem>>, vector<56x256xf32>
    %38 = arith.truncf %37 : vector<56x256xf32> to vector<56x256xbf16>
    %c2 = arith.constant 2 : index
    %c0_25 = arith.constant 0 : index
    %c0_26 = arith.constant 0 : index
    %39 = vector.load %arg4[%c2, %c0_25, %c0_26] : memref<4x256x128xbf16, #tpu.memory_space<vmem>>, vector<1x256x128xbf16>
    %40 = vector.shape_cast %39 : vector<1x256x128xbf16> to vector<256x128xbf16>
    %cst_27 = arith.constant dense<0.000000e+00> : vector<56x128xf32>
    %41 = tpu.matmul %38, %40, %cst_27 {dimension_numbers = #tpu.dot_dimension_numbers<[1], [0], [0], [1], [0, 0, 1, 1], [], []>} : vector<56x256xbf16>, vector<256x128xbf16>, vector<56x128xf32> -> vector<56x128xf32>
    %42 = arith.addf %32, %41 : vector<56x128xf32>
    %43 = vector.extract_strided_slice %37 {offsets = [0, 0], sizes = [56, 64], strides = [1, 1]} : vector<56x256xf32> to vector<56x64xf32>
    %44 = arith.maximumf %36, %43 : vector<56x64xf32>
    %45 = vector.extract_strided_slice %37 {offsets = [0, 64], sizes = [56, 64], strides = [1, 1]} : vector<56x256xf32> to vector<56x64xf32>
    %46 = arith.maximumf %44, %45 : vector<56x64xf32>
    %c9 = arith.constant 9 : index
    %c0_28 = arith.constant 0 : index
    %47 = vector.load %arg8[%c9, %c0_28] : memref<72x256xf32, #tpu.memory_space<vmem>>, vector<56x256xf32>
    %48 = arith.truncf %47 : vector<56x256xf32> to vector<56x256xbf16>
    %c3 = arith.constant 3 : index
    %c0_29 = arith.constant 0 : index
    %c0_30 = arith.constant 0 : index
    %49 = vector.load %arg4[%c3, %c0_29, %c0_30] : memref<4x256x128xbf16, #tpu.memory_space<vmem>>, vector<1x256x128xbf16>
    %50 = vector.shape_cast %49 : vector<1x256x128xbf16> to vector<256x128xbf16>
    %cst_31 = arith.constant dense<0.000000e+00> : vector<56x128xf32>
    %51 = tpu.matmul %48, %50, %cst_31 {dimension_numbers = #tpu.dot_dimension_numbers<[1], [0], [0], [1], [0, 0, 1, 1], [], []>} : vector<56x256xbf16>, vector<256x128xbf16>, vector<56x128xf32> -> vector<56x128xf32>
    %52 = arith.addf %42, %51 : vector<56x128xf32>
    %53 = vector.extract_strided_slice %47 {offsets = [0, 0], sizes = [56, 64], strides = [1, 1]} : vector<56x256xf32> to vector<56x64xf32>
    %54 = arith.maximumf %46, %53 : vector<56x64xf32>
    %c0_32 = arith.constant 0 : index
    %c0_33 = arith.constant 0 : index
    %55 = vector.load %arg5[%c0_32, %c0_33] : memref<1x128xf32, #tpu.memory_space<vmem>>, vector<1x128xf32>
    %56 = vector.broadcast %55 : vector<1x128xf32> to vector<56x128xf32>
    %57 = arith.addf %52, %56 : vector<56x128xf32>
    %cst_34 = arith.constant 0.000000e+00 : f32
    %58 = vector.broadcast %cst_34 : f32 to vector<56x128xf32>
    %59 = arith.maximumf %57, %58 : vector<56x128xf32>
    %60 = arith.truncf %59 : vector<56x128xf32> to vector<56x128xbf16>
    %c0_35 = arith.constant 0 : index
    %c0_36 = arith.constant 0 : index
    %c0_37 = arith.constant 0 : index
    %61 = vector.load %arg7[%c0_35, %c0_36, %c0_37] : memref<1x56x128xbf16, #tpu.memory_space<vmem>>, vector<1x56x128xbf16>
    %62 = vector.shape_cast %61 : vector<1x56x128xbf16> to vector<56x128xbf16>
    %63 = vector.shape_cast %60 : vector<56x128xbf16> to vector<1x56x128xbf16>
    tpu.vector_store %arg7[%c0_35, %c0_36, %c0_37], %63 {strides = array<i32>} : memref<1x56x128xbf16, #tpu.memory_space<vmem>>, vector<1x56x128xbf16>,
    %64 = arith.truncf %54 : vector<56x64xf32> to vector<56x64xbf16>
    %c0_38 = arith.constant 0 : index
    %c0_39 = arith.constant 0 : index
    %c0_40 = arith.constant 0 : index
    %65 = vector.load %arg6[%c0_38, %c0_39, %c0_40] : memref<1x56x64xbf16, #tpu.memory_space<vmem>>, vector<1x56x64xbf16>
    %66 = vector.shape_cast %65 : vector<1x56x64xbf16> to vector<56x64xbf16>
    %67 = vector.shape_cast %64 : vector<56x64xbf16> to vector<1x56x64xbf16>
    tpu.vector_store %arg6[%c0_38, %c0_39, %c0_40], %67 {strides = array<i32>} : memref<1x56x64xbf16, #tpu.memory_space<vmem>>, vector<1x56x64xbf16>,
    return
  }
  func.func @transform_0(%arg0: i32, %arg1: i32) -> (i32, i32, i32, i32) {
    %c0_i32 = arith.constant 0 : i32
    %c0_i32_0 = arith.constant 0 : i32
    %c0_i32_1 = arith.constant 0 : i32
    return %arg0, %arg1, %c0_i32, %c0_i32_0 : i32, i32, i32, i32
  }
  func.func @transform_1(%arg0: i32, %arg1: i32) -> (i32, i32, i32, i32) {
    %c1_i32 = arith.constant 1 : i32
    %0 = arith.addi %arg1, %c1_i32 : i32
    %c7_i32 = arith.constant 7 : i32
    %1 = arith.muli %0, %c7_i32 : i32
    %c0_i32 = arith.constant 0 : i32
    %c0_i32_0 = arith.constant 0 : i32
    %c0_i32_1 = arith.constant 0 : i32
    return %arg0, %1, %c0_i32, %c0_i32_0 : i32, i32, i32, i32
  }
  func.func @transform_2(%arg0: i32, %arg1: i32) -> (i32, i32, i32) {
    %c0_i32 = arith.constant 0 : i32
    %c0_i32_0 = arith.constant 0 : i32
    %c0_i32_1 = arith.constant 0 : i32
    %c0_i32_2 = arith.constant 0 : i32
    return %c0_i32, %c0_i32_0, %c0_i32_1 : i32, i32, i32
  }
  func.func @transform_3(%arg0: i32, %arg1: i32) -> (i32, i32) {
    %c0_i32 = arith.constant 0 : i32
    %c0_i32_0 = arith.constant 0 : i32
    %c0_i32_1 = arith.constant 0 : i32
    return %c0_i32, %c0_i32_0 : i32, i32
  }
  func.func @transform_4(%arg0: i32, %arg1: i32) -> (i32, i32, i32) {
    %c0_i32 = arith.constant 0 : i32
    %c0_i32_0 = arith.constant 0 : i32
    return %arg0, %arg1, %c0_i32 : i32, i32, i32
  }
  func.func @transform_5(%arg0: i32, %arg1: i32) -> (i32, i32, i32) {
    %c0_i32 = arith.constant 0 : i32
    %c0_i32_0 = arith.constant 0 : i32
    return %arg0, %arg1, %c0_i32 : i32, i32, i32
  }
}

</mosaic_0001>

<bundles_post_ra>
// kernel: incept_block_3a.1
= control target key start
LH: loop header
LB: loop body
LE: loop exit
PB: predicated region body
PF: predicated region fallthrough
CT: control target
= control target key end

     0   :  { %s2428_s18 = smov 0   ;;  %s2430_s19 = smov 0   ;;  %s2958_s0 = inlined_call_operand.vmem [shape: bf16[2,8,8,256], index: 0, kind: input, shape index: {}, may-alias: {0,1}]   ;;  %s2959_s1 = inlined_call_operand.vmem [shape: bf16[2,8,8,256], index: 1, kind: input, shape index: {}, may-alias: {0,1}]   ;;  %s2960_s2 = inlined_call_operand.vmem [shape: bf16[4,256,128], index: 2, kind: input, shape index: {}]   ;;  %s2961_s3 = inlined_call_operand.vmem [shape: f32[1,128], index: 3, kind: input, shape index: {}]   ;;  %s2962_s4 = inlined_call_operand.vmem [shape: bf16[2,56,64], index: 4, kind: output, shape index: {0}]   ;;  %s2963_s5 = inlined_call_operand.vmem [shape: bf16[2,56,128], index: 5, kind: output, shape index: {1}]  }
   0x1   :  { %s2432_s20 = smov 0  }
   0x2 LB: > { %s28_s21 = sadd.s32 1, %s2390_s19  ;;  %p1851_p0 = scmp.ge.s32.totalorder %s2394_s20, 1  ;;  %s2394_s20 = sphi %s2432_s20, %s16_s20   ;;  %s2390_s19 = sphi %s2430_s19, %s2965_s19   ;;  %s2386_s18 = sphi %s2428_s18, %s2964_s18  }
   0x3   : > { %p30_p1 = scmp.ge.s32.totalorder %s28_s21, 2  ;;  %p248_p2 = scmp.lt.s32.totalorder %s2394_s20, 3 }
   0x5   : > { %s2967_s21 = smov (%p30_p1, %s28_s21), 0  ;;  %p249_p3 = pnand %p1851_p0, %p248_p2 }
   0x6   : > { %v2292_v0 = vld [vmem:[%s2960_s2 + $0xc0] sm:$0xff] (!%p249_p3)   ;;  %v2396_v3 = vmov (!%p249_p3), 0.0   ;;  %v2296_v5 = vld [vmem:[%s2960_s2 + $0xc8] sm:$0xff] (!%p249_p3)   ;;  %v2300_v9 = vld [vmem:[%s2960_s2 + $0xd0] sm:$0xff] (!%p249_p3)   ;;  %p316_p4 = scmp.lt.s32.totalorder (!%p249_p3), %s2386_s18, 1  ;;  %s2397_s8 = smov (!%p249_p3), 64  }
   0x7   : > { %252 = sbr.rel (%p249_p3) target bundleno = 327 (0x147), region = 36  ;;  %v2293_v1 = vld [vmem:[%s2960_s2 + $0x40] sm:$0xff] (!%p249_p3)   ;;  %2070 = vmatprep.subr.bf16.mxu0 (!%p249_p3), %v2292_v0  ;;  %406 = vst [vmem:[#allocation2 + $0x88] sm:$0xff] (!%p249_p3), %v2396_v3  ;;  %405 = vst [vmem:[#allocation2 + $0x80] sm:$0xff] (!%p249_p3), %v2396_v3  ;;  %v2297_v6 = vld [vmem:[%s2960_s2 + $0x48] sm:$0xff] (!%p249_p3)   ;;  %vm972_vm1 = vcmask (!%p249_p3), 1046528  }
   0x8   : > { %v2294_v2 = vld [vmem:[%s2960_s2 + $0x80] sm:$0xff] (!%p249_p3)   ;;  %2110 = vmatprep.subr.bf16.mxu1 (!%p249_p3), %v2293_v1  ;;  %v2298_v7 = vld [vmem:[%s2960_s2 + $0x88] sm:$0xff] (!%p249_p3)   ;;  %v2301_v10 = vld [vmem:[%s2960_s2 + $0x50] sm:$0xff] (!%p249_p3)   ;;  %vm579_vm0 = vsmask.f32 (!%p249_p3), 7424  ;;  %vm1678_vm2 = vcmask (!%p249_p3), 519168  }
   0x9   : > { %v2295_v4 = vld [vmem:[%s2960_s2] sm:$0xff] (!%p249_p3)   ;;  %2071 = vmatpush3.bf16.msra.mxu0 (!%p249_p3), %v2294_v2  ;;  %v2299_v8 = vld [vmem:[%s2960_s2 + $0x8] sm:$0xff] (!%p249_p3)   ;;  %v2302_v11 = vld [vmem:[%s2960_s2 + $0x90] sm:$0xff] (!%p249_p3)  }
   0xa   : > { %2111 = vmatpush3.bf16.msra.mxu1 (!%p249_p3), %v2295_v4  ;;  %2072 = vmatprep.subr.bf16.mxu0 (!%p249_p3), %v2296_v5  ;;  %v2303_v12 = vld [vmem:[%s2960_s2 + $0x10] sm:$0xff] (!%p249_p3)   ;;  %v2304_v13 = vld [vmem:[%s2960_s2 + $0xd8] sm:$0xff] (!%p249_p3)   ;;  %v2308_v17 = vld [vmem:[%s2960_s2 + $0xe0] sm:$0xff] (!%p249_p3)  }
   0xb   : > { %2112 = vmatprep.subr.bf16.mxu1 (!%p249_p3), %v2297_v6  ;;  %v2305_v14 = vld [vmem:[%s2960_s2 + $0x58] sm:$0xff] (!%p249_p3)   ;;  %v2309_v18 = vld [vmem:[%s2960_s2 + $0x60] sm:$0xff] (!%p249_p3)   ;;  %v2312_v21 = vld [vmem:[%s2960_s2 + $0xe8] sm:$0xff] (!%p249_p3)  }
   0xc   : > { %v2306_v15 = vld [vmem:[%s2960_s2 + $0x98] sm:$0xff] (!%p249_p3)   ;;  %v2310_v19 = vld [vmem:[%s2960_s2 + $0xa0] sm:$0xff] (!%p249_p3)   ;;  %v2313_v22 = vld [vmem:[%s2960_s2 + $0x68] sm:$0xff] (!%p249_p3)  }
   0xd   : > { %2073 = vmatpush3.bf16.msra.mxu0 (!%p249_p3), %v2298_v7  ;;  %v2307_v16 = vld [vmem:[%s2960_s2 + $0x18] sm:$0xff] (!%p249_p3)   ;;  %v2311_v20 = vld [vmem:[%s2960_s2 + $0x20] sm:$0xff] (!%p249_p3)   ;;  %v2314_v23 = vld [vmem:[%s2960_s2 + $0xa8] sm:$0xff] (!%p249_p3)  }
   0xe   : > { %2113 = vmatpush3.bf16.msra.mxu1 %v2299_v8  ;;  %2074 = vmatprep.subr.bf16.mxu0 %v2300_v9  ;;  %s2969_s18 = smov (!%p316_p4, %s2386_s18), 1  ;;  %v2315_v24 = vld [vmem:[%s2960_s2 + $0x28] sm:$0xff]   ;;  %v2316_v25 = vld [vmem:[%s2960_s2 + $0xf0] sm:$0xff]   ;;  %v2320_v29 = vld [vmem:[%s2960_s2 + $0xf8] sm:$0xff]  }
   0xf   : > { %2114 = vmatprep.subr.bf16.mxu1 %v2301_v10  ;;  %v2317_v26 = vld [vmem:[%s2960_s2 + $0x70] sm:$0xff]   ;;  %s2035_s9 = sshll.u32 %s2969_s18, 6  ;;  %v2321_v30 = vld [vmem:[%s2960_s2 + $0x78] sm:$0xff]   ;;  %v2328_v48 = vld [vmem:[%s2960_s2 + $0x140] sm:$0xff]  }
  0x10   : > { %v2318_v27 = vld [vmem:[%s2960_s2 + $0xb0] sm:$0xff]   ;;  %s2548_s22 = scalar_lea.vmem %s2958_s0, %s2035_s9  ;;  %v2322_v31 = vld [vmem:[%s2960_s2 + $0xb8] sm:$0xff]   ;;  %v2329_v49 = vld [vmem:[%s2960_s2 + $0x1c0] sm:$0xff]   ;;  %s2037_s16 = sadd.s32 56, %s2035_s9 }
  0x11   : > { %2075 = vmatpush3.bf16.msra.mxu0 %v2302_v11  ;;  %v2319_v28 = vld [vmem:[%s2960_s2 + $0x30] sm:$0xff]   ;;  %v2323_v32 = vld [vmem:[%s2960_s2 + $0x38] sm:$0xff]   ;;  %v365_v33 = vld [vmem:[%s2548_s22] sm:$0xff]  ;;  %s2668_s6 = scalar_lea.vmem %s2959_s1, %s2037_s16 }
  0x12   : > { %2115 = vmatpush3.bf16.msra.mxu1 %v2303_v12  ;;  %2076 = vmatprep.subr.bf16.mxu0 %v2304_v13  ;;  %v366_v34 = vld [vmem:[%s2548_s22 + $0x8] sm:$0xff]  ;;  %v367_v35 = vld [vmem:[%s2548_s22 + $0x10] sm:$0xff]  ;;  %v368_v36 = vld [vmem:[%s2548_s22 + $0x18] sm:$0xff]  ;;  %v2560_v37 = vunpack.c.h.bf16 %v365_v33  ;;  %v2576_v46 = vunpack.c.l.bf16 %v365_v33 }
  0x13   : > { %2116 = vmatprep.subr.bf16.mxu1 %v2305_v14  ;;  %v2562_v38 = vunpack.c.l.bf16 %v366_v34  ;;  %v2564_v39 = vunpack.c.h.bf16 %v366_v34  ;;  %v2566_v40 = vunpack.c.l.bf16 %v367_v35  ;;  %v2325_v41 = vld [vmem:[%s2548_s22 + $0x4] ss:$8 sps:$4 sm:$0xff]   ;;  %v2569_v42 = vunpack.c.h.bf16 %v367_v35  ;;  %v2324_v45 = vld [vmem:[%s2548_s22 + $0x14] ss:$8 sps:$4 sm:$0xff]   ;;  %v2327_v47 = vld [vmem:[%s2548_s22] ss:$8 sps:$4 sm:$0xff]  }
  0x14   : > { %v2571_v43 = vunpack.c.l.bf16 %v368_v36  ;;  %v2573_v44 = vunpack.c.h.bf16 %v368_v36  ;;  %387 = vst [vmem:[#allocation2 + $0x8] sm:$0xff] %v2560_v37  ;;  %938 = vmatprep.mubr.bf16.mxu1 %v2325_v41  ;;  %386 = vst [vmem:[#allocation2] sm:$0xff] %v2576_v46  ;;  %v2331_v51 = vld [vmem:[%s2960_s2 + $0x180] sm:$0xff]   ;;  %v2598_v53 = vld [vmem:[%s2548_s22 + $0x10] ss:$8 sps:$4 sm:$0xff]   ;;  %v600_v55 = vshll.u32 %v2324_v45, 16 }
  0x15   : > { %2077 = vmatpush3.bf16.msra.mxu0 %v2306_v15  ;;  %388 = vst [vmem:[#allocation2 + $0x10] sm:$0xff] %v2562_v38  ;;  %389 = vst [vmem:[#allocation2 + $0x18] sm:$0xff] %v2564_v39  ;;  %v2257_v50 = vpack.i.bf16 %v2562_v38, %v2576_v46  ;;  %v2333_v54 = vld [vmem:[%s2960_s2 + $0x1c8] sm:$0xff]   ;;  %v2277_v58 = vpack.i.bf16 %v2569_v42, %v2564_v39  ;;  %v588_v61 = vshll.u32 %v2598_v53, 16  ;;  %v369_v62 = vld [vmem:[%s2548_s22 + $0x20] sm:$0xff]  ;;  %v612_v0 = vshrl.u32 %v2324_v45, 16 }
  0x16   : > { %2117 = vmatpush3.bf16.msra.mxu1 %v2307_v16  ;;  %2078 = vmatprep.subr.bf16.mxu0 %v2308_v17  ;;  %v2262_v52 = vpack.i.bf16 %v2571_v43, %v2566_v40  ;;  %v2335_v57 = vld [vmem:[%s2960_s2 + $0x188] sm:$0xff]   ;;  %v2620_v2 = vunpack.c.l.bf16 %v369_v62  ;;  %v2622_v3 = vunpack.c.h.bf16 %v369_v62  ;;  %v602_v9 = vrot.slane %v600_v55, 1  ;;  %v2339_v11 = vld [vmem:[%s2960_s2 + $0x1d0] sm:$0xff]   ;;  %v2345_v33 = vld [vmem:[%s2960_s2 + $0x198] sm:$0xff]  }
  0x17   : > { %2118 = vmatprep.subr.bf16.mxu1 %v2309_v18  ;;  %2258 = vrot.lane.b32.xlu0 %v2257_v50, %s2397_s8  ;;  %v370_v63 = vld [vmem:[%s2548_s22 + $0x28] sm:$0xff]  ;;  %v371_v34 = vld [vmem:[%s2548_s22 + $0x30] sm:$0xff]  ;;  %v2344_v62 = vld [vmem:[%s2960_s2 + $0x118] sm:$0xff]  }
  0x18   : > { %v2624_v4 = vunpack.c.l.bf16 %v370_v63  ;;  %v2627_v5 = vld [vmem:[%s2548_s22 + $0x24] ss:$8 sps:$4 sm:$0xff]   ;;  %v2630_v6 = vld [vmem:[%s2548_s22 + $0x20] ss:$8 sps:$4 sm:$0xff]   ;;  %v2632_v10 = vunpack.c.h.bf16 %v370_v63  ;;  %v614_v16 = vor.u32 %v612_v0, %v602_v9  ;;  %v2678_v41 = vunpack.c.l.bf16 %v371_v34 }
  0x19   : > { %2079 = vmatpush3.bf16.msra.mxu0 %v2310_v19  ;;  %v616_v14 = vshll.u32 %v2627_v5, 16  ;;  %v590_v19 = vrot.slane %v588_v61, 1  ;;  %v2351_v61 = vld [vmem:[%s2960_s2 + $0x1e8] sm:$0xff]   ;;  %v628_v63 = vshrl.u32 %v2627_v5, 16 }
  0x1a   : > { %2119 = vmatpush3.bf16.msra.mxu1 %v2311_v20  ;;  %2080 = vmatprep.subr.bf16.mxu0 %v2312_v21  ;;  %v2267_v17 = vpack.i.bf16 %v2624_v4, %v2620_v2  ;;  %v2330_v20 = vld [vmem:[%s2960_s2 + $0x100] sm:$0xff]   ;;  %v2353_v0 = vld [vmem:[%s2960_s2 + $0x1a8] sm:$0xff]  }
  0x1b   : > { %2120 = vmatprep.subr.bf16.mxu1 %v2313_v22  ;;  %v2603_v56 = vld [vmem:[#allocation2 + $0x8] sm:$0xfe]  ;;  %2263 = vrot.lane.b32.xlu0 %v2262_v52, %s2397_s8  ;;  %v2613_v60 = vld [vmem:[#allocation2] sm:$0xfe]  ;;  %v2648_v21 = vrot.slane %v616_v14, 1  ;;  %v2341_v22 = vld [vmem:[%s2960_s2 + $0x190] sm:$0xff]   ;;  %v2272_v52 = vpack.i.bf16 %v2560_v37, %v2678_v41 }
  0x1c   : > { %v543_v59 = vpack.c.bf16 %v2564_v39, %v2603_v56  ;;  %v542_v1 = vpack.c.bf16 %v2562_v38, %v2613_v60  ;;  %2268 = vrot.lane.b32.xlu1 %v2267_v17, %s2397_s8 }
  0x1d   : > { %2081 = vmatpush3.bf16.msra.mxu0 %v2314_v23  ;;  %v630_v14 = vor.u32 %v628_v63, %v2648_v21 }
  0x1e   : > { %2121 = vmatpush3.bf16.msra.mxu1 %v2315_v24  ;;  %2082 = vmatprep.subr.bf16.mxu0 %v2316_v25  ;;  %v593_v7 = vshrl.u32 %v543_v59, 16  ;;  %v595_v8 = vshll.u32 %v543_v59, 16  ;;  %v581_v12 = vshrl.u32 %v542_v1, 16  ;;  %v583_v13 = vshll.u32 %v542_v1, 16  ;;  %v2332_v24 = vld [vmem:[%s2960_s2 + $0x148] sm:$0xff]  }
  0x1f   : > { %2122 = vmatprep.subr.bf16.mxu1 %v2317_v26  ;;  %2278 = vrot.lane.b32.xlu0 %v2277_v58, %s2397_s8  ;;  %v604_v26 = vshrl.u32 %v2598_v53, 16  ;;  %v2342_v58 = vld [vmem:[%s2960_s2 + $0x158] sm:$0xff]   ;;  %v2282_v59 = vpack.i.bf16 %v2622_v3, %v2573_v44  ;;  %v2354_v1 = vld [vmem:[%s2548_s22 + $0x34] ss:$0 sps:$4 sm:$0xff]  }
  0x20   : > { %v597_v15 = vrot.slane %v595_v8, 1  ;;  %v585_v18 = vrot.slane %v583_v13, 1  ;;  %2273 = vrot.lane.b32.xlu1 %v2272_v52, %s2397_s8  ;;  %v620_v8 = vshrl.u32 %v2630_v6, 16  ;;  %v2368_v52 = vld [vmem:[%s2548_s22 + $0x2c] ss:$8 sps:$4 sm:$0xff]  }
  0x21   : > { %2083 = vmatpush3.bf16.msra.mxu0 %v2318_v27  ;;  %v608_v27 = vshll.u32 %v2630_v6, 16  ;;  %v606_v35 = vor.u32 %v604_v26, %v590_v19  ;;  %v1354_v63 = vshll.u32 %v2368_v52, 16 }
  0x22   : > { %2123 = vmatpush3.bf16.msra.mxu1 %v2319_v28  ;;  %2084 = vmatprep.subr.bf16.mxu0 %v2320_v29  ;;  %v598_v23 = vor.u32 %v597_v15, %v593_v7  ;;  %v586_v25 = vor.u32 %v585_v18, %v581_v12  ;;  %v619_v29 = vsel %vm579_vm0, %v614_v16, %v2648_v21  ;;  %v2355_v7 = vld [vmem:[%s2548_s22 + $0x30] ss:$0 sps:$4 sm:$0xff]   ;;  %v2348_v15 = vld [vmem:[%s2960_s2 + $0x120] sm:$0xff]  }
  0x23   : > { %2124 = vmatprep.subr.bf16.mxu1 %v2321_v30  ;;  %v2343_v30 = vld [vmem:[%s2960_s2 + $0x1d8] sm:$0xff]   ;;  %v610_v36 = vrot.slane %v608_v27, 1 }
  0x24   : > { %v603_v28 = vsel %vm579_vm0, %v598_v23, %v602_v9  ;;  %v2346_v9 = vld [vmem:[%s2960_s2 + $0x160] sm:$0xff]   ;;  %2283 = vrot.lane.b32.xlu1 %v2282_v59, %s2397_s8 }
  0x25   : > { %2085 = vmatpush3.bf16.msra.mxu0 %v2322_v31  ;;  %778 = vmatprep.mubr.bf16.mxu0 %v603_v28  ;;  %v591_v31 = vsel %vm579_vm0, %v586_v25, %v590_v19  ;;  %v611_v55 = vsel %vm579_vm0, %v606_v35, %v610_v36  ;;  %v622_v17 = vor.u32 %v620_v8, %v610_v36  ;;  %v2350_v19 = vld [vmem:[%s2960_s2 + $0x168] sm:$0xff]   ;;  %v2361_v25 = vld [vmem:[%s2960_s2 + $0x1f8] sm:$0xff]   ;;  %v2773_v35 = vld [vmem:[#allocation2 + $0x10] sm:$0xfe] }
  0x26   : > { %2125 = vmatpush3.bf16.msra.mxu1 %v2323_v32  ;;  %2150 = vmatprep.subr.bf16.mxu0 %v2328_v48  ;;  %v2334_v32 = vld [vmem:[%s2960_s2 + $0x108] sm:$0xff]   ;;  %v2338_v48 = vld [vmem:[%s2960_s2 + $0x150] sm:$0xff]  }
  0x27   : > { %2190 = vmatprep.subr.bf16.mxu1 %v2329_v49  ;;  %v2358_v36 = vld [vmem:[%s2960_s2 + $0x130] sm:$0xff]  }
  0x28   : > { %779 = vmatmul.mubr.bf16.vlgmr.msra.gmra.mrb[0].mxu0 %v591_v31  ;;  %v1262_v31 = vld [vmem:[#allocation2 + $0x18] sm:$0xfe] }
  0x29   : > { %939 = vmatmul.mubr.bf16.vlgmr.msra.gmra.mrb[0].mxu1 %v2327_v47  ;;  %2151 = vmatpush3.bf16.msra.mxu0 %v2330_v20  ;;  %v2683_v47 = vld [vmem:[%s2668_s6] sm:$0xff] }
  0x2a   : > { %946 = vmatprep.mubr.bf16.mxu1 %v2324_v45  ;;  %2191 = vmatpush3.bf16.msra.mxu1 %v2331_v51  ;;  %v2680_v45 = vunpack.c.h.bf16 %v371_v34  ;;  %v402_v49 = vunpack.c.h.bf16 %v2683_v47  ;;  %v2690_v50 = vunpack.c.l.bf16 %v2683_v47  ;;  %v2347_v51 = vld [vmem:[%s2960_s2 + $0x1e0] sm:$0xff]  }
  0x2b   : > { %2192 = vmatprep.subr.bf16.mxu1 %v2333_v54  ;;  %786 = vmatprep.mubr.bf16.mxu0 %v619_v29  ;;  %v2340_v54 = vld [vmem:[%s2960_s2 + $0x110] sm:$0xff]   ;;  %v2365_v34 = vld [vmem:[%s2548_s22 + $0x1c] ss:$8 sps:$4 sm:$0xff]   ;;  %v2795_v47 = vld [vmem:[#allocation2 + $0x80] sm:$0x1] }
  0x2c   : > { %2152 = vmatprep.subr.bf16.mxu0 %v2332_v24  ;;  %404 = vst [vmem:[#allocation2 + $0x78] sm:$0xff] %v402_v49  ;;  %403 = vst [vmem:[#allocation2 + $0x70] sm:$0xff] %v2690_v50  ;;  %1251 = vrot.lane.b32.xlu1 %v2690_v50, %s2397_s8  ;;  %v2352_v24 = vld [vmem:[%s2960_s2 + $0x128] sm:$0xff]   ;;  %v2356_v29 = vld [vmem:[%s2960_s2 + $0x170] sm:$0xff]  }
  0x2d   : > { %2153 = vmatpush3.bf16.msra.mxu0 %v2334_v32 }
  0x2e   : > { %2193 = vmatpush3.bf16.msra.mxu1 %v2335_v57  ;;  %v2349_v57 = vld [vmem:[%s2960_s2 + $0x1a0] sm:$0xff]   ;;  %2154 = vmatprep.subr.bf16.mxu0 %v2338_v48  ;;  %v1277_v48 = vpack.c.bf16 %v2566_v40, %v2773_v35 }
  0x2f   : > { %2194 = vmatprep.subr.bf16.mxu1 %v2339_v11 }
  0x30   : > { %787 = vmatmul.mubr.bf16.gmra.mrb[4].mxu0 %v611_v55  ;;  %v1319_v59 = vshrl.u32 %v1277_v48, 16 }
  0x31   : > { %947 = vmatmul.mubr.bf16.gmra.mrb[4].mxu1 %v2598_v53  ;;  %v2287_v53 = vpack.i.bf16 %v2680_v45, %v2632_v10  ;;  %2155 = vmatpush3.bf16.msra.mxu0 %v2340_v54 }
  0x32   : > { %954 = vmatprep.mubr.bf16.mxu1 %v2627_v5  ;;  %2195 = vmatpush3.bf16.msra.mxu1 %v2341_v22  ;;  %v2359_v22 = vld [vmem:[%s2960_s2 + $0x1b0] sm:$0xff]  }
  0x33   : > { %2196 = vmatprep.subr.bf16.mxu1 %v2343_v30  ;;  %2288 = vrot.lane.b32.xlu0 %v2287_v53, %s2397_s8  ;;  %v2734_v11 = vld [vmem:[#allocation2 + $0x78] sm:$0x1]  ;;  %v2736_v12 = vld [vmem:[#allocation2 + $0x70] sm:$0x1] }
  0x34   : > { %2156 = vmatprep.subr.bf16.mxu0 %v2342_v58  ;;  %v545_v5 = vpack.c.bf16 %v2734_v11, %v2680_v45  ;;  %v544_v13 = vpack.c.bf16 %v2736_v12, %v2678_v41  ;;  %v2363_v30 = vld [vmem:[%s2960_s2 + $0x1b8] sm:$0xff]   ;;  %v1350_v58 = vshrl.u32 %v2365_v34, 16 }
  0x35   : > { %2157 = vmatpush3.bf16.msra.mxu0 %v2344_v62  ;;  %v2360_v53 = vld [vmem:[%s2960_s2 + $0x178] sm:$0xff]  }
  0x36   : > { %2197 = vmatpush3.bf16.msra.mxu1 %v2345_v33  ;;  %v632_v16 = vshll.u32 %v545_v5, 16  ;;  %v624_v18 = vshll.u32 %v544_v13, 16  ;;  %2158 = vmatprep.subr.bf16.mxu0 %v2346_v9  ;;  %v639_v20 = vshrl.u32 %v545_v5, 16  ;;  %v636_v32 = vshrl.u32 %v544_v13, 16  ;;  %v2369_v9 = vld [vmem:[%s2548_s22 + $0x28] ss:$8 sps:$4 sm:$0xff]  }
  0x37   : > { %2198 = vmatprep.subr.bf16.mxu1 %v2347_v51  ;;  %v1278_v33 = vpack.c.bf16 %v2569_v42, %v1262_v31  ;;  %v2367_v51 = vld [vmem:[%s2548_s22 + $0x18] ss:$8 sps:$4 sm:$0xff]   ;;  %v2364_v13 = vld [vmem:[%s2548_s22 + $0xc] ss:$8 sps:$4 sm:$0xff]  }
  0x38   : > { %v634_v21 = vrot.slane %v632_v16, 1  ;;  %v626_v23 = vrot.slane %v624_v18, 1  ;;  %v1326_v62 = vshll.u32 %v2367_v51, 16  ;;  %v2362_v5 = vld [vmem:[%s2960_s2 + $0x138] sm:$0xff]  }
  0x39   : > { %955 = vmatmul.mubr.bf16.gmra.mrb[8].mxu1 %v2630_v6  ;;  %v2357_v6 = vld [vmem:[%s2960_s2 + $0x1f0] sm:$0xff]   ;;  %2159 = vmatpush3.bf16.msra.mxu0 %v2348_v15  ;;  %v1331_v54 = vshrl.u32 %v1278_v33, 16  ;;  %v1333_v55 = vshll.u32 %v1278_v33, 16  ;;  %v1356_v15 = vrot.slane %v1354_v63, 1  ;;  %v1358_v33 = vshrl.u32 %v2369_v9, 16 }
  0x3a   : > { %2199 = vmatpush3.bf16.msra.mxu1 %v2349_v57  ;;  %962 = vmatprep.mubr.bf16.mxu1 %v2354_v1  ;;  %v635_v26 = vsel %vm579_vm0, %v630_v14, %v634_v21  ;;  %v627_v27 = vsel %vm579_vm0, %v622_v17, %v626_v23  ;;  %v641_v28 = vor.u32 %v639_v20, %v634_v21  ;;  %v1338_v57 = vshll.u32 %v2365_v34, 16 }
  0x3b   : > { %2200 = vmatprep.subr.bf16.mxu1 %v2351_v61  ;;  %2160 = vmatprep.subr.bf16.mxu0 %v2350_v19  ;;  %v1321_v61 = vshll.u32 %v1277_v48, 16  ;;  %v638_v1 = vor.u32 %v636_v32, %v626_v23  ;;  %v1328_v14 = vrot.slane %v1326_v62, 1  ;;  %v1346_v21 = vshll.u32 %v2369_v9, 16 }
  0x3c   : > { %794 = vmatprep.mubr.bf16.mxu0 %v635_v26  ;;  %v1340_v8 = vrot.slane %v1338_v57, 1 }
  0x3d   : > { %795 = vmatmul.mubr.bf16.gmra.mrb[8].mxu0 %v627_v27 }
  0x3e   : > { %2201 = vmatpush3.bf16.msra.mxu1 %v2353_v0  ;;  %2161 = vmatpush3.bf16.msra.mxu0 %v2352_v24  ;;  %v1276_v0 = vld [vmem:[#allocation2 + $0x88] sm:$0x1]  ;;  %v1352_v18 = vor.u32 %v1350_v58, %v1340_v8 }
  0x3f   : > { %2202 = vmatprep.subr.bf16.mxu1 %v2357_v6  ;;  %802 = vmatprep.mubr.bf16.mxu0 %v641_v28  ;;  %v1323_v6 = vrot.slane %v1321_v61, 1  ;;  %v1284_v16 = vpack.c.bf16 %v1276_v0, %v402_v49  ;;  %v2366_v49 = vld [vmem:[%s2548_s22 + $0x8] ss:$8 sps:$4 sm:$0xff]   ;;  %v1348_v28 = vrot.slane %v1346_v21, 1  ;;  %v2370_v61 = vld [vmem:[%s2668_s6 + $0x4] ss:$0 sps:$4 sm:$0xff]  }
  0x40   : > { %2162 = vmatprep.subr.bf16.mxu0 %v2356_v29  ;;  %v1357_v24 = vsel %vm579_vm0, %v1352_v18, %v1356_v15  ;;  %v1283_v29 = vpack.c.bf16 %v2795_v47, %v2690_v50  ;;  %v1570_v18 = vrot.slane %v2624_v4, 1  ;;  %s2230_s22 = smul.u32 28, %s2969_s18 }
  0x41   : > { %963 = vmatmul.mubr.bf16.gmra.mrb[12].mxu1 %v2355_v7  ;;  %v1335_v7 = vrot.slane %v1333_v55, 1  ;;  %v1324_v19 = vor.u32 %v1323_v6, %v1319_v59  ;;  %v1370_v26 = vshll.u32 %v1284_v16, 16  ;;  %v1377_v55 = vshrl.u32 %v1284_v16, 16 }
  0x42   : > { %2203 = vmatpush3.bf16.msra.mxu1 %v2359_v22  ;;  %2163 = vmatpush3.bf16.msra.mxu0 %v2358_v36  ;;  %v1342_v22 = vshrl.u32 %v2367_v51, 16  ;;  %v1362_v36 = vshll.u32 %v1283_v29, 16  ;;  %v1374_v59 = vshrl.u32 %v1283_v29, 16  ;;  %s2869_s17 = scalar_lea.vmem %s2962_s4, %s2230_s22  ;;  %s2935_s27 = scalar_lea.vmem %s2963_s5, %s2230_s22 }
  0x43   : > { %2204 = vmatprep.subr.bf16.mxu1 %v2361_v25  ;;  %2164 = vmatprep.subr.bf16.mxu0 %v2360_v53  ;;  %v1336_v17 = vor.u32 %v1335_v7, %v1331_v54  ;;  %v1329_v23 = vsel %vm579_vm0, %v1324_v19, %v1328_v14  ;;  %v1366_v25 = vshrl.u32 %v2368_v52, 16  ;;  %v1372_v31 = vrot.slane %v1370_v26, 1 }
  0x44   : > { %v1344_v27 = vor.u32 %v1342_v22, %v1328_v14  ;;  %v1360_v53 = vor.u32 %v1358_v33, %v1348_v28  ;;  %v1364_v54 = vrot.slane %v1362_v36, 1  ;;  %v2826_v19 = vrot.slane %v2678_v41, 1 }
  0x45   : > { %803 = vmatmul.mubr.bf16.gmra.mrb[12].mxu0 %v638_v1  ;;  %v1341_v20 = vsel %vm579_vm0, %v1336_v17, %v1340_v8  ;;  %v1379_v58 = vor.u32 %v1377_v55, %v1372_v31  ;;  %v973_v22 = vrot.slane %v2613_v60, 1 }
  0x46   : > { %2205 = vmatpush3.bf16.msra.mxu1 %v2363_v30  ;;  %2165 = vmatpush3.bf16.msra.mxu0 %v2362_v5  ;;  %v1368_v30 = vor.u32 %v1366_v25, %v1356_v15  ;;  %v1349_v32 = vsel %vm579_vm0, %v1344_v27, %v1348_v28  ;;  %v1365_v57 = vsel %vm579_vm0, %v1360_v53, %v1364_v54  ;;  %v1004_v5 = vrot.slane %v2603_v56, 1 }
  0x47   : > { %1204 = vmatprep.mubr.bf16.mxu0 %v2364_v13  ;;  %1516 = vmatprep.mubr.bf16.mxu1 %v1341_v20  ;;  %v1376_v62 = vor.u32 %v1374_v59, %v1364_v54  ;;  %v1566_v13 = vrot.slane %v2571_v43, 1  ;;  %v974_v20 = vrot.slane %v2562_v38, 1  ;;  %v1005_v25 = vrot.slane %v2564_v39, 1 }
  0x48   : > { %v1373_v48 = vsel %vm579_vm0, %v1368_v30, %v1372_v31  ;;  %v1011_v59 = vrot.slane %v2622_v3, 1 }
  0x49   : > { %1517 = vmatmul.mubr.bf16.vlgmr.msra.gmra.mrb[16].mxu1 %v1329_v23  ;;  %v975_v26 = vsel %vm972_vm1, %v973_v22, %v974_v20 }
  0x4a   : > { %1524 = vmatprep.mubr.bf16.mxu1 %v1357_v24  ;;  %v1563_v24 = vrot.slane %v2773_v35, 1 }
  0x4d   : > { %1205 = vmatmul.mubr.bf16.vlgmr.msra.gmra.mrb[16].mxu0 %v2366_v49 }
  0x4e   : > { %1212 = vmatprep.mubr.bf16.mxu0 %v2365_v34  ;;  %v2371_v34 = vld [vmem:[%s2668_s6] ss:$0 sps:$4 sm:$0xff]  }
  0x51   : > { %1525 = vmatmul.mubr.bf16.gmra.mrb[20].mxu1 %v1349_v32  ;;  %v1006_v32 = vsel %vm972_vm1, %v1004_v5, %v1005_v25 }
  0x52   : > { %1532 = vmatprep.mubr.bf16.mxu1 %v1373_v48 }
  0x55   : > { %1213 = vmatmul.mubr.bf16.gmra.mrb[20].mxu0 %v2367_v51 }
  0x56   : > { %1220 = vmatprep.mubr.bf16.mxu0 %v2368_v52  ;;  %v1564_v52 = vrot.slane %v2566_v40, 1 }
  0x59   : > { %1533 = vmatmul.mubr.bf16.gmra.mrb[24].mxu1 %v1365_v57 }
  0x5a   : > { %1540 = vmatprep.mubr.bf16.mxu1 %v1379_v58  ;;  %v1009_v58 = vrot.slane %v2573_v44, 1 }
  0x5d   : > { %1221 = vmatmul.mubr.bf16.gmra.mrb[24].mxu0 %v2369_v9  ;;  %v1568_v9 = vrot.slane %v2620_v2, 1 }
  0x5e   : > { %1228 = vmatprep.mubr.bf16.mxu0 %v2370_v61 }
  0x5f   : > { %v983_v57 = vsel %vm972_vm1, %v1568_v9, %v1570_v18 }
  0x61   : > { %1541 = vmatmul.mubr.bf16.gmra.mrb[28].mxu1 %v1376_v62 }
  0x65   : > { %1229 = vmatmul.mubr.bf16.gmra.mrb[28].mxu0 %v2371_v34 }
  0x89   : > { %v2259_v0 = vpop.permute.xlu0 %2258 }
  0x8a   : > { %v2260_v51 = vunpack.i.l.bf16 %v2259_v0  ;;  %v2261_v8 = vunpack.i.h.bf16 %v2259_v0  ;;  %v981_v0 = vsel %vm972_vm1, %v1566_v13, %v1568_v9 }
  0x8c   : > { %v489_v7 = vmax.f32 %v2576_v46, %v2260_v51  ;;  %v490_v21 = vmax.f32 %v2562_v38, %v2261_v8  ;;  %v1013_v51 = vrot.slane %v2632_v10, 1 }
  0x8d   : > { %v2818_v15 = vpop.permute.xlu0 %2263 }
  0x8e   : > { %v2805_v63 = vpop.permute.xlu1 %2268  ;;  %v496_v46 = vmax.f32 %v489_v7, %v2560_v37  ;;  %v2266_v17 = vunpack.i.h.bf16 %v2818_v15  ;;  %v2265_v56 = vunpack.i.l.bf16 %v2818_v15  ;;  %v497_v55 = vmax.f32 %v490_v21, %v2564_v39 }
  0x8f   : > { %v2270_v1 = vunpack.i.l.bf16 %v2805_v63  ;;  %v2271_v28 = vunpack.i.h.bf16 %v2805_v63  ;;  %v1565_v39 = vsel %vm972_vm1, %v1563_v24, %v1564_v52  ;;  %v1007_v21 = vrot.slane %v2569_v42, 1 }
  0x90   : > { %v492_v37 = vmax.f32 %v2571_v43, %v2266_v17  ;;  %v491_v49 = vmax.f32 %v2566_v40, %v2265_v56 }
  0x91   : > { %v493_v6 = vmax.f32 %v2620_v2, %v2270_v1  ;;  %v2279_v60 = vpop.permute.xlu0 %2278  ;;  %v494_v7 = vmax.f32 %v2624_v4, %v2271_v28 }
  0x92   : > { %v2816_v14 = vpop.permute.xlu1 %2273  ;;  %v499_v35 = vmax.f32 %v492_v37, %v2573_v44  ;;  %v2281_v36 = vunpack.i.h.bf16 %v2279_v60  ;;  %v2280_v54 = vunpack.i.l.bf16 %v2279_v60  ;;  %v498_v61 = vmax.f32 %v491_v49, %v2569_v42 }
  0x93   : > { %v2276_v16 = vunpack.i.h.bf16 %v2816_v14  ;;  %v500_v30 = vmax.f32 %v493_v6, %v2622_v3  ;;  %v2275_v62 = vunpack.i.l.bf16 %v2816_v14  ;;  %v1012_v3 = vsel %vm972_vm1, %v1009_v58, %v1011_v59 }
  0x94   : > { %v979_v37 = vsel %vm972_vm1, %v1564_v52, %v1566_v13  ;;  %v532_v24 = vmax.f32 %v497_v55, %v2280_v54  ;;  %v501_v42 = vmax.f32 %v494_v7, %v2632_v10  ;;  %v1010_v13 = vsel %vm972_vm1, %v1007_v21, %v1009_v58 }
  0x95   : > { %v531_v23 = vmax.f32 %v496_v46, %v2276_v16  ;;  %v1014_v16 = vsel %vm972_vm1, %v1011_v59, %v1013_v51  ;;  %v977_v46 = vsel %vm972_vm1, %v974_v20, %v1564_v52  ;;  %v1573_v20 = vsel %vm972_vm1, %v1570_v18, %v2826_v19 }
  0x96   : > { %v2284_v27 = vpop.permute.xlu1 %2283  ;;  %v1008_v52 = vsel %vm972_vm1, %v1005_v25, %v1007_v21  ;;  %v1015_v10 = vrot.slane %v2680_v45, 1  ;;  %v1574_v7 = vrot.slane %v2690_v50, 1 }
  0x97   : > { %v995_v29 = vmax.f32 %v531_v23, %v975_v26  ;;  %v2286_v31 = vunpack.i.h.bf16 %v2284_v27  ;;  %v2285_v33 = vunpack.i.l.bf16 %v2284_v27 }
  0x98   : > { %v1016_v59 = vsel %vm972_vm1, %v1013_v51, %v1015_v10  ;;  %v1575_v51 = vsel %vm972_vm1, %v2826_v19, %v1574_v7 }
  0x99   : > { %v1026_v48 = vmax.f32 %v995_v29, %v1006_v32  ;;  %v535_v53 = vmax.f32 %v500_v30, %v2286_v31  ;;  %v534_v44 = vmax.f32 %v499_v35, %v2285_v33  ;;  %v996_v30 = vmax.f32 %v532_v24, %v977_v46 }
  0x9b   : > { %v1243_v34 = vmax.f32 %v1026_v48, %v2562_v38  ;;  %v999_v5 = vmax.f32 %v535_v53, %v983_v57  ;;  %v495_v38 = vmax.f32 %v2678_v41, %v2275_v62  ;;  %v998_v22 = vmax.f32 %v534_v44, %v981_v0 }
  0x9c   : > { %v1027_v35 = vmax.f32 %v996_v30, %v1008_v52 }
  0x9d   : > { %v1254_v6 = vmax.f32 %v1243_v34, %v2261_v8  ;;  %v1030_v9 = vmax.f32 %v999_v5, %v1014_v16  ;;  %v533_v8 = vmax.f32 %v498_v61, %v2281_v36  ;;  %v1029_v49 = vmax.f32 %v998_v22, %v1012_v3 }
  0x9e   : > { %v502_v18 = vmax.f32 %v495_v38, %v2680_v45  ;;  %v1244_v55 = vmax.f32 %v1027_v35, %v2566_v40  ;;  %v1576_v3 = vrot.slane %v2795_v47, 1  ;;  %v1252_v16 = vpop.permute.xlu1 %1251 }
  0x9f   : > { %v1585_v23 = vmax.f32 %v1254_v6, %v1565_v39  ;;  %v1247_v26 = vmax.f32 %v1030_v9, %v2624_v4  ;;  %v1246_v29 = vmax.f32 %v1029_v49, %v2620_v2  ;;  %v997_v32 = vmax.f32 %v533_v8, %v979_v37 }
  0xa0   : > { %v986_v4 = vrot.slane %v2736_v12, 1 }
  0xa1   : > { %v2045_v27 = vpack.c.bf16 %v1585_v23, %v1585_v23  ;;  %v1258_v60 = vmax.f32 %v1247_v26, %v2271_v28  ;;  %v1257_v25 = vmax.f32 %v1246_v29, %v2270_v1  ;;  %v1028_v36 = vmax.f32 %v997_v32, %v1010_v13 }
  0xa2   : > { %v987_v2 = vsel %vm972_vm1, %v2826_v19, %v986_v4  ;;  %v1255_v1 = vmax.f32 %v1244_v55, %v2265_v56 }
  0xa3   : > { %1679 = vst.msk [vmem:[%s2869_s17] sm:$0xf] %vm1678_vm2, %v2045_v27  ;;  %v1589_v33 = vmax.f32 %v1258_v60, %v1573_v20  ;;  %v1588_v54 = vmax.f32 %v1257_v25, %v983_v57  ;;  %v1245_v12 = vmax.f32 %v1028_v36, %v2571_v43  ;;  %v1017_v43 = vrot.slane %v2734_v11, 1 }
  0xa4   : > { %v1586_v40 = vmax.f32 %v1255_v1, %v979_v37 }
  0xa5   : > { %v2289_v31 = vpop.permute.xlu0 %2288  ;;  %v2049_v53 = vpack.c.bf16 %v1589_v33, %v1589_v33  ;;  %v2048_v63 = vpack.c.bf16 %v1588_v54, %v1588_v54  ;;  %v1256_v61 = vmax.f32 %v1245_v12, %v2266_v17  ;;  %v1018_v56 = vsel %vm972_vm1, %v1015_v10, %v1017_v43 }
  0xa6   : > { %v2291_v28 = vunpack.i.h.bf16 %v2289_v31  ;;  %v2290_v48 = vunpack.i.l.bf16 %v2289_v31  ;;  %v2046_v44 = vpack.c.bf16 %v1586_v40, %v1586_v40 }
  0xa7   : > { %1683 = vst.msk [vmem:[%s2869_s17 + $0x10] sm:$0xf] %vm1678_vm2, %v2049_v53  ;;  %1682 = vst.msk [vmem:[%s2869_s17 + $0xc] sm:$0xf] %vm1678_vm2, %v2048_v63  ;;  %v1587_v39 = vmax.f32 %v1256_v61, %v981_v0 }
  0xa8   : > { %v537_v58 = vmax.f32 %v502_v18, %v2291_v28  ;;  %v536_v45 = vmax.f32 %v501_v42, %v2290_v48  ;;  %1680 = vst.msk [vmem:[%s2869_s17 + $0x4] sm:$0xf] %vm1678_vm2, %v2046_v44 }
  0xa9   : > { %v2047_v6 = vpack.c.bf16 %v1587_v39, %v1587_v39 }
  0xaa   : > { %v1001_v57 = vmax.f32 %v537_v58, %v987_v2  ;;  %v1000_v34 = vmax.f32 %v536_v45, %v1573_v20 }
  0xab   : > { %1681 = vst.msk [vmem:[%s2869_s17 + $0x8] sm:$0xf] %vm1678_vm2, %v2047_v6 }
  0xac   : > { %v1031_v5 = vmax.f32 %v1000_v34, %v1016_v59  ;;  %v1032_v17 = vmax.f32 %v1001_v57, %v1018_v56 }
  0xae   : > { %v1248_v15 = vmax.f32 %v1031_v5, %v2678_v41  ;;  %v1249_v0 = vmax.f32 %v1032_v17, %v2690_v50  ;;  %v1577_v41 = vsel %vm972_vm1, %v1574_v7, %v1576_v3 }
  0xb0   : > { %v1259_v11 = vmax.f32 %v1248_v15, %v2275_v62  ;;  %v1260_v46 = vmax.f32 %v1249_v0, %v1252_v16 }
  0xb2   : > { %v1590_v38 = vmax.f32 %v1259_v11, %v1575_v51  ;;  %v1591_v9 = vmax.f32 %v1260_v46, %v1577_v41 }
  0xb4   : > { %v2050_v22 = vpack.c.bf16 %v1590_v38, %v1590_v38  ;;  %v2051_v21 = vpack.c.bf16 %v1591_v9, %v1591_v9 }
  0xb6   : > { %1684 = vst.msk [vmem:[%s2869_s17 + $0x14] sm:$0xf] %vm1678_vm2, %v2050_v22  ;;  %1685 = vst.msk [vmem:[%s2869_s17 + $0x18] sm:$0xf] %vm1678_vm2, %v2051_v21 }
  0xfb   : > { %v2086_v42 = vpop.f32.mrb[0].mxu0 }
  0xfc   : > { %v2126_v19 = vpop.f32.mrb[0].mxu1  ;;  %v2087_v27 = vpop.f32.mrb[1].mxu0 }
  0xfd   : > { %v2127_v23 = vpop.f32.mrb[1].mxu1  ;;  %v2088_v52 = vadd.f32 %v2087_v27, %v2086_v42  ;;  %v2089_v13 = vpop.f32.mrb[2].mxu0 }
  0xfe   : > { %v2128_v14 = vadd.f32 %v2127_v23, %v2126_v19  ;;  %v2129_v62 = vpop.f32.mrb[2].mxu1  ;;  %v2090_v60 = vpop.f32.mrb[3].mxu0 }
  0xff   : > { %v2130_v37 = vpop.f32.mrb[3].mxu1  ;;  %v2091_v31 = vadd.f32 %v2090_v60, %v2089_v13 }
 0x100   : > { %v2131_v50 = vadd.f32 %v2130_v37, %v2129_v62  ;;  %v941_v30 = vadd.f32 %v2128_v14, %v2088_v52  ;;  %v2926_v37 = vld [vmem:[%s2961_s3] ss:$0 sm:$0xff] }
 0x102   : > { %v944_v10 = vadd.f32 %v2131_v50, %v2091_v31 }
 0x103   : > { %v2092_v35 = vpop.f32.mrb[4].mxu0 }
 0x104   : > { %v2132_v24 = vpop.f32.mrb[4].mxu1  ;;  %v2093_v28 = vpop.f32.mrb[5].mxu0 }
 0x105   : > { %v2133_v47 = vpop.f32.mrb[5].mxu1  ;;  %v2094_v36 = vadd.f32 %v2093_v28, %v2092_v35  ;;  %v2095_v2 = vpop.f32.mrb[6].mxu0 }
 0x106   : > { %v2134_v8 = vadd.f32 %v2133_v47, %v2132_v24  ;;  %v2135_v20 = vpop.f32.mrb[6].mxu1  ;;  %v2096_v48 = vpop.f32.mrb[7].mxu0 }
 0x107   : > { %v2136_v26 = vpop.f32.mrb[7].mxu1  ;;  %v2097_v54 = vadd.f32 %v2096_v48, %v2095_v2 }
 0x108   : > { %v2137_v49 = vadd.f32 %v2136_v26, %v2135_v20  ;;  %v949_v53 = vadd.f32 %v2134_v8, %v2094_v36 }
 0x10a   : > { %v952_v12 = vadd.f32 %v2137_v49, %v2097_v54 }
 0x10c   : > { %v2138_v29 = vpop.f32.mrb[8].mxu1 }
 0x10d   : > { %v2139_v32 = vpop.f32.mrb[9].mxu1 }
 0x10e   : > { %v2140_v18 = vadd.f32 %v2139_v32, %v2138_v29  ;;  %v2141_v4 = vpop.f32.mrb[10].mxu1 }
 0x10f   : > { %v2142_v33 = vpop.f32.mrb[11].mxu1 }
 0x110   : > { %v2143_v25 = vadd.f32 %v2142_v33, %v2141_v4  ;;  %v2098_v59 = vpop.f32.mrb[8].mxu0 }
 0x111   : > { %v2099_v61 = vpop.f32.mrb[9].mxu0 }
 0x112   : > { %v2100_v57 = vadd.f32 %v2099_v61, %v2098_v59  ;;  %v2101_v34 = vpop.f32.mrb[10].mxu0 }
 0x113   : > { %v2102_v40 = vpop.f32.mrb[11].mxu0 }
 0x114   : > { %v2144_v55 = vpop.f32.mrb[12].mxu1  ;;  %v2917_v43 = vadd.f32 %v2140_v18, %v2100_v57  ;;  %v2103_v7 = vadd.f32 %v2102_v40, %v2101_v34 }
 0x115   : > { %v2145_v58 = vpop.f32.mrb[13].mxu1 }
 0x116   : > { %v2146_v45 = vadd.f32 %v2145_v58, %v2144_v55  ;;  %v2147_v63 = vpop.f32.mrb[14].mxu1  ;;  %v2919_v39 = vadd.f32 %v2143_v25, %v2103_v7 }
 0x117   : > { %v2148_v1 = vpop.f32.mrb[15].mxu1 }
 0x118   : > { %v2104_v5 = vpop.f32.mrb[12].mxu0 }
 0x119   : > { %v2105_v44 = vpop.f32.mrb[13].mxu0 }
 0x11a   : > { %v2106_v56 = vadd.f32 %v2105_v44, %v2104_v5  ;;  %v2107_v6 = vpop.f32.mrb[14].mxu0 }
 0x11b   : > { %v2108_v15 = vpop.f32.mrb[15].mxu0 }
 0x11c   : > { %v2206_v17 = vpop.f32.mrb[16].mxu1  ;;  %v2921_v51 = vadd.f32 %v2146_v45, %v2106_v56 }
 0x11d   : > { %v2207_v11 = vpop.f32.mrb[17].mxu1 }
 0x11e   : > { %v2208_v0 = vadd.f32 %v2207_v11, %v2206_v17  ;;  %v2209_v3 = vpop.f32.mrb[18].mxu1 }
 0x11f   : > { %v2210_v16 = vpop.f32.mrb[19].mxu1 }
 0x120   : > { %v2211_v46 = vadd.f32 %v2210_v16, %v2209_v3  ;;  %v2166_v38 = vpop.f32.mrb[16].mxu0 }
 0x121   : > { %v2167_v41 = vpop.f32.mrb[17].mxu0 }
 0x122   : > { %v2168_v9 = vadd.f32 %v2167_v41, %v2166_v38  ;;  %v2169_v22 = vpop.f32.mrb[18].mxu0 }
 0x123   : > { %v2170_v21 = vpop.f32.mrb[19].mxu0 }
 0x124   : > { %v2212_v19 = vpop.f32.mrb[20].mxu1  ;;  %v1236_v23 = vadd.f32 %v2168_v9, %v941_v30  ;;  %v2171_v14 = vadd.f32 %v2170_v21, %v2169_v22 }
 0x125   : > { %v2213_v62 = vpop.f32.mrb[21].mxu1 }
 0x126   : > { %v2214_v50 = vadd.f32 %v2213_v62, %v2212_v19  ;;  %v2215_v24 = vpop.f32.mrb[22].mxu1  ;;  %v1548_v47 = vadd.f32 %v2208_v0, %v1236_v23  ;;  %v1237_v8 = vadd.f32 %v2171_v14, %v944_v10 }
 0x127   : > { %v2216_v20 = vpop.f32.mrb[23].mxu1 }
 0x128   : > { %v2217_v26 = vadd.f32 %v2216_v20, %v2215_v24  ;;  %v1599_v49 = vadd.f32 %v2926_v37, %v1548_v47  ;;  %v1549_v42 = vadd.f32 %v2211_v46, %v1237_v8  ;;  %v2172_v27 = vpop.f32.mrb[20].mxu0 }
 0x129   : > { %v2173_v52 = vpop.f32.mrb[21].mxu0 }
 0x12a   : > { %v1600_v13 = vadd.f32 %v2926_v37, %v1549_v42  ;;  %v2174_v60 = vadd.f32 %v2173_v52, %v2172_v27  ;;  %v2175_v29 = vpop.f32.mrb[22].mxu0  ;;  %v1606_v32 = vmax.f32 %v1599_v49, 0.0 }
 0x12b   : > { %v2176_v30 = vpop.f32.mrb[23].mxu0 }
 0x12c   : > { %v2218_v31 = vpop.f32.mrb[24].mxu1  ;;  %v1607_v18 = vmax.f32 %v1600_v13, 0.0  ;;  %v1238_v4 = vadd.f32 %v2174_v60, %v949_v53  ;;  %v2177_v33 = vadd.f32 %v2176_v30, %v2175_v29 }
 0x12d   : > { %v2219_v25 = vpop.f32.mrb[25].mxu1 }
 0x12e   : > { %v2220_v10 = vadd.f32 %v2219_v25, %v2218_v31  ;;  %v2221_v35 = vpop.f32.mrb[26].mxu1  ;;  %v2055_v28 = vpack.c.bf16 %v1607_v18, %v1606_v32  ;;  %v1550_v36 = vadd.f32 %v2214_v50, %v1238_v4  ;;  %v1239_v2 = vadd.f32 %v2177_v33, %v952_v12 }
 0x12f   : > { %v2222_v48 = vpop.f32.mrb[27].mxu1 }
 0x130   : > { %v2223_v54 = vadd.f32 %v2222_v48, %v2221_v35  ;;  %2056 = vst [vmem:[%s2935_s27] sm:$0xff] %v2055_v28   ;;  %v1601_v55 = vadd.f32 %v2926_v37, %v1550_v36  ;;  %v1551_v53 = vadd.f32 %v2217_v26, %v1239_v2  ;;  %v2178_v58 = vpop.f32.mrb[24].mxu0 }
 0x131   : > { %v2179_v45 = vpop.f32.mrb[25].mxu0 }
 0x132   : > { %v1602_v63 = vadd.f32 %v2926_v37, %v1551_v53  ;;  %v2180_v1 = vadd.f32 %v2179_v45, %v2178_v58  ;;  %v2181_v59 = vpop.f32.mrb[26].mxu0  ;;  %v1608_v34 = vmax.f32 %v1601_v55, 0.0 }
 0x133   : > { %v2182_v61 = vpop.f32.mrb[27].mxu0 }
 0x134   : > { %v2224_v57 = vpop.f32.mrb[28].mxu1  ;;  %v1609_v40 = vmax.f32 %v1602_v63, 0.0  ;;  %v1240_v7 = vadd.f32 %v2180_v1, %v2917_v43  ;;  %v2183_v12 = vadd.f32 %v2182_v61, %v2181_v59 }
 0x135   : > { %v2225_v5 = vpop.f32.mrb[29].mxu1 }
 0x136   : > { %v2226_v44 = vadd.f32 %v2225_v5, %v2224_v57  ;;  %v2227_v56 = vpop.f32.mrb[30].mxu1  ;;  %v2060_v6 = vpack.c.bf16 %v1609_v40, %v1608_v34  ;;  %v1552_v15 = vadd.f32 %v2220_v10, %v1240_v7  ;;  %v1241_v17 = vadd.f32 %v2183_v12, %v2919_v39 }
 0x137   : > { %v2228_v11 = vpop.f32.mrb[31].mxu1 }
 0x138   : > { %2068 = vst [vmem:[%s2935_s27 + $0x8] sm:$0xff] %v2060_v6   ;;  %v1603_v0 = vadd.f32 %v2926_v37, %v1552_v15  ;;  %v1553_v3 = vadd.f32 %v2223_v54, %v1241_v17  ;;  %v2184_v16 = vpop.f32.mrb[28].mxu0 }
 0x139   : > { %v2185_v46 = vpop.f32.mrb[29].mxu0 }
 0x13a   : > { %v1604_v38 = vadd.f32 %v2926_v37, %v1553_v3  ;;  %v2186_v43 = vadd.f32 %v2185_v46, %v2184_v16  ;;  %v2187_v41 = vpop.f32.mrb[30].mxu0  ;;  %v1610_v22 = vmax.f32 %v1603_v0, 0.0 }
 0x13b   : > { %v2188_v9 = vpop.f32.mrb[31].mxu0 }
 0x13c   : > { %v1611_v21 = vmax.f32 %v1604_v38, 0.0  ;;  %v1242_v19 = vadd.f32 %v2186_v43, %v2921_v51 }
 0x13e   : > { %v2065_v23 = vpack.c.bf16 %v1611_v21, %v1610_v22  ;;  %v1554_v39 = vadd.f32 %v2226_v44, %v1242_v19 }
 0x140   : > { %2069 = vst [vmem:[%s2935_s27 + $0x10] sm:$0xff] %v2065_v23   ;;  %v1605_v14 = vadd.f32 %v2926_v37, %v1554_v39 }
 0x142   : > { %v1612_v62 = vmax.f32 %v1605_v14, 0.0 }
 0x144   : > { %v2044_v50 = vpack.c.bf16 %v1612_v62, %v1612_v62 }
 0x146   : > { %1648 = vst [vmem:[%s2935_s27 + $0x18] sm:$0xf] %v2044_v50 }
 0x147 PF: > { %s16_s20 = sadd.s32 1, %s2394_s20   ;;  %s2964_s18 = smov %s2390_s19 }
 0x148   : > { %p13_p5 = scmp.ge.s32.totalorder %s16_s20, 4   ;;  %s2965_s19 = smov %s2967_s21 }
 0x14a   :  { %15 = sbr.rel (!%p13_p5) target bundleno = 2 (0x2), region = 84 }

</bundles_post_ra>
